<compile_context>
chip_gen: v6e
topology: v6e:2x2x1
jax: 0.10.0
libtpu: 0.0.40
codegen_flags: <defaults>
</compile_context>

<pallas_src>
import jax
import jax.numpy as jnp
from jax.experimental import pallas as pl
from jax.experimental.pallas import tpu as pltpu


def _dma_copy_kernel(x_hbm_ref, o_hbm_ref, sem):
    # Single HBM -> HBM DMA of the whole array; no VMEM staging, no grid.
    cp = pltpu.make_async_copy(x_hbm_ref, o_hbm_ref, sem)
    cp.start()
    cp.wait()


def _lane_dense_view(shape):
    """Pick a flattened shape whose last dim is a multiple of 128 when
    possible (layout hygiene; the DMA is contiguous either way)."""
    total = 1
    for d in shape:
        total *= d
    if total % 128 == 0:
        return (total // 128, 128)
    # Fall back to the original shape: full-array DMA is still a single
    # contiguous stream, correctness is unaffected.
    return shape


def _materialized_copy(x):
    orig_shape = x.shape
    flat_shape = _lane_dense_view(orig_shape)
    x_flat = x.reshape(flat_shape)

    out_flat = pl.pallas_call(
        _dma_copy_kernel,
        out_shape=jax.ShapeDtypeStruct(flat_shape, x.dtype),
        in_specs=[pl.BlockSpec(memory_space=pl.ANY)],
        out_specs=pl.BlockSpec(memory_space=pl.ANY),
        scratch_shapes=[pltpu.SemaphoreType.DMA(())],
    )(x_flat)

    return out_flat.reshape(orig_shape)


def persistence_forward(x, weights=None, materialize=False):
    """Forward pass of Persistence: returns x unchanged. `weights` is unused,
    exactly matching the PyTorch module (the nn.Parameter is never read).

    materialize=False (default): zero-cost identity -- no kernel, no HBM traffic.
    materialize=True: single HBM->HBM DMA producing a fresh, distinct output
    buffer (x is NOT aliased or donated).
    """
    if not materialize:
        return x
    return _materialized_copy(x)


if __name__ == "__main__":
    key = jax.random.PRNGKey(0)
    k_x, k_w = jax.random.split(key)

    # Small shapes consistent with the module: batch=2, in_channels=4, spatial=16.
    in_channels = 4
    x = jax.random.normal(k_x, (2, in_channels, 16, 16), dtype=jnp.float32)

    # Parameter mirroring nn.Parameter(torch.randn(in_channels)); unused in forward.
    weights = jax.random.normal(k_w, (in_channels,), dtype=jnp.float32)

    # Fast path (the real perf fix): pure identity, no kernel launched.
    out_fast = persistence_forward(x, weights)
    assert out_fast.shape == x.shape and out_fast.dtype == x.dtype

    # Materialized path: run the single HBM->HBM DMA copy kernel once.
    out = persistence_forward(x, weights, materialize=True)
    out = jax.block_until_ready(out)

    assert out.shape == x.shape
    assert out.dtype == x.dtype
    assert bool(jnp.array_equal(out, x))

    print("KERNEL_OK")
</pallas_src>

<mosaic_0001>
module attributes {stable_mosaic.version = 11 : i64} {
  func.func @_dma_copy_kernel(%arg0: memref<16x128xf32, #tpu.memory_space<any>>, %arg1: memref<16x128xf32, #tpu.memory_space<any>>, %arg2: memref<!tpu.dma_semaphore, #tpu.memory_space<semaphore_mem>>) attributes {dimension_semantics = [], scalar_prefetch = 0 : i64, scratch_operands = 1 : i64, tpu.core_type = #tpu.core_type<tc>} {
    tpu.enqueue_dma source(%arg0 : memref<16x128xf32, #tpu.memory_space<any>>) target(%arg1 : memref<16x128xf32, #tpu.memory_space<any>>) target_semaphore(%arg2 : memref<!tpu.dma_semaphore, #tpu.memory_space<semaphore_mem>>)
    tpu.wait_dma2 semaphore(%arg2 : memref<!tpu.dma_semaphore, #tpu.memory_space<semaphore_mem>>) src(%arg0 : memref<16x128xf32, #tpu.memory_space<any>>) dst(%arg1 : memref<16x128xf32, #tpu.memory_space<any>>)
    return
  }
}

</mosaic_0001>

<bundles_post_ra>
// kernel: tpu_custom_call.1
= control target key start
LH: loop header
LB: loop body
LE: loop exit
PB: predicated region body
PF: predicated region fallthrough
CT: control target
= control target key end

     0   :  { %s28_s6 = smov [#allocation2]   ;;  %s29_s7 = smov 131072   ;;  %s47_s0 = inlined_call_operand.hbm [shape: f32[16,128], index: 0, kind: input, shape index: {}]   ;;  %s48_s1 = inlined_call_operand.hbm [shape: f32[16,128], index: 1, kind: output, shape index: {}]  }
   0x1   :  { %s30_s8 = smov 0  }
   0x2   :  { %12 = dma.general %s47_s0, 256, %s48_s1, %s28_s6, %s29_s7, [#allocation4], %s30_s8, 0  }
   0x3   :  { %26 = dma.done.wait [#allocation2], 256 }
   0x4   :  { %27 = vsyncadd [#allocation2], 4294967040 }
   0x5   :  { %16 = vsyncmov [#allocation2] }
   0x8   :  { %s17_s13 = vpop.sfrf %16 }
   0x9   :  { %p22_p0 = scmp.ne.s32.totalorder %s17_s13, 0 }
   0xb   :  { %21 = shalt.err (%p22_p0)  }

</bundles_post_ra>
